<compile_context>
chip_gen: v5e
topology: v5e:2x2
jax: 0.10.0
libtpu: 0.0.40
codegen_flags: <defaults>
</compile_context>

<pallas_src>
import functools

import jax
import jax.numpy as jnp
from jax.experimental import pallas as pl
from jax.experimental.pallas import tpu as pltpu


def _concat_dma_kernel(sizes, *args):
    """Pure HBM->HBM concat along the flattened (lane-dense) last axis.

    args = (*in_refs, out_ref, sem).  Input i has shape (N, sizes[i]) and is
    copied directly into out_ref[:, off_i : off_i + sizes[i]] by one async
    DMA.  All DMAs are issued first and waited on afterwards so they overlap.
    No VMEM is touched.
    """
    n_in = len(sizes)
    in_refs = args[:n_in]
    out_ref = args[n_in]
    sem = args[n_in + 1]

    copies = []
    off = 0
    for i, (r, sz) in enumerate(zip(in_refs, sizes)):
        cp = pltpu.make_async_copy(r, out_ref.at[:, off:off + sz], sem.at[i])
        cp.start()
        copies.append(cp)
        off += sz
    for cp in copies:
        cp.wait()


def _concat_flat_rows(flat_ins, sizes, n_rows, dtype):
    """Concat row-major 2-D inputs (n_rows, sizes[i]) along the last axis.

    All `sizes` (and hence all column offsets) are multiples of 128, so every
    DMA is lane/tile aligned in the HBM layout.
    """
    total = sum(sizes)
    itemsize = jnp.dtype(dtype).itemsize
    total_bytes = 2 * n_rows * total * itemsize  # read everything + write once

    return pl.pallas_call(
        functools.partial(_concat_dma_kernel, tuple(sizes)),
        out_shape=jax.ShapeDtypeStruct((n_rows, total), dtype),
        in_specs=[pl.BlockSpec(memory_space=pl.ANY) for _ in flat_ins],
        out_specs=pl.BlockSpec(memory_space=pl.ANY),
        scratch_shapes=[pltpu.SemaphoreType.DMA((len(flat_ins),))],
        compiler_params=pltpu.CompilerParams(has_side_effects=True),
        cost_estimate=pl.CostEstimate(
            flops=0, transcendentals=0, bytes_accessed=total_bytes),
    )(*flat_ins)


def concat_channels(tensors):
    """Pallas equivalent of Concat.forward(tensors) with dim=1 (NCHW)."""
    tensors = list(tensors)
    if len(tensors) == 1:
        return tensors[0]

    shapes = [t.shape for t in tensors]
    N, _, H, W = shapes[0]
    for s in shapes:
        assert len(s) == 4 and s[0] == N and s[2] == H and s[3] == W, (
            "non-concat dims must match")
    dtype = tensors[0].dtype
    for t in tensors:
        if t.dtype != dtype:
            raise TypeError(
                "Concat: all inputs must share a dtype (got %s vs %s)"
                % (t.dtype, dtype))

    chans = tuple(int(s[1]) for s in shapes)
    c_out = sum(chans)
    hw = H * W

    if hw % 128 == 0:
        # Lane-aligned path: every per-input offset (c_i * hw) is a multiple
        # of 128, so each copy is a tile-aligned strided DMA.
        flat_ins = [t.reshape(N, c * hw) for t, c in zip(tensors, chans)]
        sizes = [c * hw for c in chans]
        out_flat = _concat_flat_rows(flat_ins, sizes, N, dtype)
        return out_flat.reshape(N, c_out, H, W)

    # Fallback: H*W not a multiple of 128.  Pad the spatial axis up to the
    # next 128 multiple in the wrapper (cheap XLA pad), run the identical
    # lane-aligned DMA concat, and slice the padding back off.
    hw_p = ((hw + 127) // 128) * 128
    flat_ins = []
    sizes = []
    for t, c in zip(tensors, chans):
        t3 = t.reshape(N, c, hw)
        t3 = jnp.pad(t3, ((0, 0), (0, 0), (0, hw_p - hw)))
        flat_ins.append(t3.reshape(N, c * hw_p))
        sizes.append(c * hw_p)
    out_flat = _concat_flat_rows(flat_ins, sizes, N, dtype)
    out3 = out_flat.reshape(N, c_out, hw_p)[:, :, :hw]
    return out3.reshape(N, c_out, H, W)


class ConcatPallas:
    """Mirror of the PyTorch Concat module (backend='pytorch', dim fixed to 1)."""

    def __init__(self, dim=1):
        self.dim = 1  # the reference module hard-codes dim=1 in __init__

    def __call__(self, x, dim=None):
        d = dim if dim is not None else self.dim
        assert d == 1, "Pallas kernel implements channel (dim=1) concat"
        return concat_channels(list(x))


if __name__ == "__main__":
    key = jax.random.PRNGKey(0)
    k1, k2, k3 = jax.random.split(key, 3)

    # Small NCHW inputs with matching N/H/W, differing channel counts.
    x = jax.random.normal(k1, (2, 4, 16, 16), dtype=jnp.float32)
    y = jax.random.normal(k2, (2, 6, 16, 16), dtype=jnp.float32)
    z = jax.random.normal(k3, (2, 2, 16, 16), dtype=jnp.float32)

    module = ConcatPallas()
    out = module((x, y, z))
    out = jax.block_until_ready(out)

    ref = jnp.concatenate([x, y, z], axis=1)
    assert out.shape == (2, 12, 16, 16), out.shape
    assert out.dtype == ref.dtype
    assert bool(jnp.allclose(out, ref)), "mismatch vs jnp.concatenate reference"

    # Exercise the non-128-aligned (padded) path as well (H*W = 10*10 = 100).
    a = jax.random.normal(k1, (2, 3, 10, 10), dtype=jnp.float32)
    b = jax.random.normal(k2, (2, 5, 10, 10), dtype=jnp.float32)
    out2 = jax.block_until_ready(module((a, b)))
    assert bool(jnp.allclose(out2, jnp.concatenate([a, b], axis=1)))

    # bf16 sanity check (sub-32-bit sublane packing, still lane-aligned DMAs).
    xb = x.astype(jnp.bfloat16)
    yb = y.astype(jnp.bfloat16)
    out3 = jax.block_until_ready(module((xb, yb)))
    assert bool(jnp.array_equal(out3, jnp.concatenate([xb, yb], axis=1)))

    print("KERNEL_OK")
</pallas_src>

<mosaic_0001>
module attributes {stable_mosaic.version = 11 : i64} {
  func.func @_concat_dma_kernel(%arg0: memref<2x1024xf32, #tpu.memory_space<any>>, %arg1: memref<2x1536xf32, #tpu.memory_space<any>>, %arg2: memref<2x512xf32, #tpu.memory_space<any>>, %arg3: memref<2x3072xf32, #tpu.memory_space<any>>, %arg4: memref<3x!tpu.dma_semaphore, #tpu.memory_space<semaphore_mem>>) attributes {dimension_semantics = [], scalar_prefetch = 0 : i64, scratch_operands = 1 : i64, tpu.core_type = #tpu.core_type<tc>} {
    %c0_i32 = arith.constant 0 : i32
    %c0_i32_0 = arith.constant 0 : i32
    %c0_i32_1 = arith.constant 0 : i32
    %0 = tpu.memref_slice %arg3[%c0_i32_0, %c0_i32_1] : memref<2x3072xf32, #tpu.memory_space<any>> -> memref<2x1024xf32, #tpu.memory_space<any>>
    %1 = tpu.memref_slice %arg4[%c0_i32] : memref<3x!tpu.dma_semaphore, #tpu.memory_space<semaphore_mem>> -> memref<1x!tpu.dma_semaphore, #tpu.memory_space<semaphore_mem>>
    %2 = tpu.memref_squeeze %1 : memref<1x!tpu.dma_semaphore, #tpu.memory_space<semaphore_mem>> -> memref<!tpu.dma_semaphore, #tpu.memory_space<semaphore_mem>>
    tpu.enqueue_dma source(%arg0 : memref<2x1024xf32, #tpu.memory_space<any>>) target(%0 : memref<2x1024xf32, #tpu.memory_space<any>>) target_semaphore(%2 : memref<!tpu.dma_semaphore, #tpu.memory_space<semaphore_mem>>)
    %c1_i32 = arith.constant 1 : i32
    %c0_i32_2 = arith.constant 0 : i32
    %c1024_i32 = arith.constant 1024 : i32
    %3 = tpu.memref_slice %arg3[%c0_i32_2, %c1024_i32] : memref<2x3072xf32, #tpu.memory_space<any>> -> memref<2x1536xf32, #tpu.memory_space<any>>
    %4 = tpu.memref_slice %arg4[%c1_i32] : memref<3x!tpu.dma_semaphore, #tpu.memory_space<semaphore_mem>> -> memref<1x!tpu.dma_semaphore, #tpu.memory_space<semaphore_mem>>
    %5 = tpu.memref_squeeze %4 : memref<1x!tpu.dma_semaphore, #tpu.memory_space<semaphore_mem>> -> memref<!tpu.dma_semaphore, #tpu.memory_space<semaphore_mem>>
    tpu.enqueue_dma source(%arg1 : memref<2x1536xf32, #tpu.memory_space<any>>) target(%3 : memref<2x1536xf32, #tpu.memory_space<any>>) target_semaphore(%5 : memref<!tpu.dma_semaphore, #tpu.memory_space<semaphore_mem>>)
    %c2_i32 = arith.constant 2 : i32
    %c0_i32_3 = arith.constant 0 : i32
    %c2560_i32 = arith.constant 2560 : i32
    %6 = tpu.memref_slice %arg3[%c0_i32_3, %c2560_i32] : memref<2x3072xf32, #tpu.memory_space<any>> -> memref<2x512xf32, #tpu.memory_space<any>>
    %7 = tpu.memref_slice %arg4[%c2_i32] : memref<3x!tpu.dma_semaphore, #tpu.memory_space<semaphore_mem>> -> memref<1x!tpu.dma_semaphore, #tpu.memory_space<semaphore_mem>>
    %8 = tpu.memref_squeeze %7 : memref<1x!tpu.dma_semaphore, #tpu.memory_space<semaphore_mem>> -> memref<!tpu.dma_semaphore, #tpu.memory_space<semaphore_mem>>
    tpu.enqueue_dma source(%arg2 : memref<2x512xf32, #tpu.memory_space<any>>) target(%6 : memref<2x512xf32, #tpu.memory_space<any>>) target_semaphore(%8 : memref<!tpu.dma_semaphore, #tpu.memory_space<semaphore_mem>>)
    %c0_i32_4 = arith.constant 0 : i32
    %c0_i32_5 = arith.constant 0 : i32
    %c0_i32_6 = arith.constant 0 : i32
    %9 = tpu.memref_slice %arg3[%c0_i32_5, %c0_i32_6] : memref<2x3072xf32, #tpu.memory_space<any>> -> memref<2x1024xf32, #tpu.memory_space<any>>
    %10 = tpu.memref_slice %arg4[%c0_i32_4] : memref<3x!tpu.dma_semaphore, #tpu.memory_space<semaphore_mem>> -> memref<1x!tpu.dma_semaphore, #tpu.memory_space<semaphore_mem>>
    %11 = tpu.memref_squeeze %10 : memref<1x!tpu.dma_semaphore, #tpu.memory_space<semaphore_mem>> -> memref<!tpu.dma_semaphore, #tpu.memory_space<semaphore_mem>>
    tpu.wait_dma2 semaphore(%11 : memref<!tpu.dma_semaphore, #tpu.memory_space<semaphore_mem>>) src(%arg0 : memref<2x1024xf32, #tpu.memory_space<any>>) dst(%9 : memref<2x1024xf32, #tpu.memory_space<any>>)
    %c1_i32_7 = arith.constant 1 : i32
    %c0_i32_8 = arith.constant 0 : i32
    %c1024_i32_9 = arith.constant 1024 : i32
    %12 = tpu.memref_slice %arg3[%c0_i32_8, %c1024_i32_9] : memref<2x3072xf32, #tpu.memory_space<any>> -> memref<2x1536xf32, #tpu.memory_space<any>>
    %13 = tpu.memref_slice %arg4[%c1_i32_7] : memref<3x!tpu.dma_semaphore, #tpu.memory_space<semaphore_mem>> -> memref<1x!tpu.dma_semaphore, #tpu.memory_space<semaphore_mem>>
    %14 = tpu.memref_squeeze %13 : memref<1x!tpu.dma_semaphore, #tpu.memory_space<semaphore_mem>> -> memref<!tpu.dma_semaphore, #tpu.memory_space<semaphore_mem>>
    tpu.wait_dma2 semaphore(%14 : memref<!tpu.dma_semaphore, #tpu.memory_space<semaphore_mem>>) src(%arg1 : memref<2x1536xf32, #tpu.memory_space<any>>) dst(%12 : memref<2x1536xf32, #tpu.memory_space<any>>)
    %c2_i32_10 = arith.constant 2 : i32
    %c0_i32_11 = arith.constant 0 : i32
    %c2560_i32_12 = arith.constant 2560 : i32
    %15 = tpu.memref_slice %arg3[%c0_i32_11, %c2560_i32_12] : memref<2x3072xf32, #tpu.memory_space<any>> -> memref<2x512xf32, #tpu.memory_space<any>>
    %16 = tpu.memref_slice %arg4[%c2_i32_10] : memref<3x!tpu.dma_semaphore, #tpu.memory_space<semaphore_mem>> -> memref<1x!tpu.dma_semaphore, #tpu.memory_space<semaphore_mem>>
    %17 = tpu.memref_squeeze %16 : memref<1x!tpu.dma_semaphore, #tpu.memory_space<semaphore_mem>> -> memref<!tpu.dma_semaphore, #tpu.memory_space<semaphore_mem>>
    tpu.wait_dma2 semaphore(%17 : memref<!tpu.dma_semaphore, #tpu.memory_space<semaphore_mem>>) src(%arg2 : memref<2x512xf32, #tpu.memory_space<any>>) dst(%15 : memref<2x512xf32, #tpu.memory_space<any>>)
    return
  }
}

</mosaic_0001>

<bundles_post_ra>
// kernel: tpu_custom_call.1
= control target key start
LH: loop header
LB: loop body
LE: loop exit
PB: predicated region body
PF: predicated region fallthrough
CT: control target
= control target key end

     0   :  { %s91_s21 = smov [#allocation2]   ;;  %s92_s22 = smov [#allocation3]   ;;  %s136_s0 = inlined_call_operand.hbm [shape: f32[2,1024], index: 0, kind: input, shape index: {}]   ;;  %s137_s3 = inlined_call_operand.hbm [shape: f32[2,3072], index: 3, kind: output, shape index: {}]   ;;  %s138_s1 = inlined_call_operand.hbm [shape: f32[2,1536], index: 1, kind: input, shape index: {}]   ;;  %s139_s2 = inlined_call_operand.hbm [shape: f32[2,512], index: 2, kind: input, shape index: {}]  }
   0x1   :  { %s12_s14 = sshll.u32 %s136_s0, 4  ;;  %s14_s17 = sshll.u32 %s137_s3, 4  ;;  %s13_s14 = int_to_ptr.hbm [resolvable:$true] %s12_s14  ;;  %s15_s17 = int_to_ptr.hbm [resolvable:$true] %s14_s17 }
   0x2   :  { %s19_s20 = scalar_lea.hbm %s137_s3, 16  ;;  %s93_s23 = smov 0  }
   0x3   :  { %18 = dma.general %s13_s14, 256, %s15_s17, %s91_s21, %s92_s22, [#allocation4], %s93_s23, 0  }
   0x4   :  { %s25_s26 = sshll.u32 %s138_s1, 4  ;;  %s27_s27 = sshll.u32 %s19_s20, 4  ;;  %s26_s26 = int_to_ptr.hbm [resolvable:$true] %s25_s26  ;;  %s28_s27 = int_to_ptr.hbm [resolvable:$true] %s27_s27 }
   0x5   :  { %s94_s0 = smov [#allocation2 + $0x1]   ;;  %s95_s28 = smov [#allocation5]  }
   0x6   :  { %31 = dma.general %s26_s26, 384, %s28_s27, %s94_s0, %s95_s28, [#allocation6], %s93_s23, 0  }
   0x7   :  { %s32_s4 = scalar_lea.hbm %s137_s3, 40  ;;  %s38_s7 = sshll.u32 %s139_s2, 4  ;;  %s39_s7 = int_to_ptr.hbm [resolvable:$true] %s38_s7 }
   0x8   :  { %s40_s8 = sshll.u32 %s32_s4, 4  ;;  %s96_s9 = smov [#allocation2 + $0x2]   ;;  %s41_s8 = int_to_ptr.hbm [resolvable:$true] %s40_s8 }
   0x9   :  { %s97_s10 = smov [#allocation7]  }
   0xa   :  { %44 = dma.general %s39_s7, 128, %s41_s8, %s96_s9, %s97_s10, [#allocation8], %s93_s23, 0  }
   0xb   :  { %85 = dma.done.wait [#allocation2], 256 }
   0xc   :  { %86 = vsyncadd [#allocation2], 4294967040 }
   0xd   :  { %87 = dma.done.wait [#allocation2 + $0x1], 384 }
   0xe   :  { %88 = vsyncadd [#allocation2 + $0x1], 4294966912 }
   0xf   :  { %89 = dma.done.wait [#allocation2 + $0x2], 128 }
  0x10   :  { %90 = vsyncadd [#allocation2 + $0x2], 4294967168 }
  0x11   :  { %55 = vsyncmov [#allocation2] }
  0x14   :  { %s56_s1 = vpop.sfrf %55 }
  0x15   :  { %p75_p0 = scmp.ne.s32.totalorder %s56_s1, 0 }
  0x17   :  { %60 = shalt.err (%p75_p0)  }
  0x18   :  { %62 = vsyncmov [#allocation2 + $0x1] }
  0x1b   :  { %s63_s3 = vpop.sfrf %62 }
  0x1c   :  { %p76_p1 = scmp.ne.s32.totalorder %s63_s3, 0 }
  0x1e   :  { %67 = shalt.err (%p76_p1)  }
  0x1f   :  { %69 = vsyncmov [#allocation2 + $0x2] }
  0x22   :  { %s70_s2 = vpop.sfrf %69 }
  0x23   :  { %p77_p2 = scmp.ne.s32.totalorder %s70_s2, 0 }
  0x25   :  { %74 = shalt.err (%p77_p2)  }

</bundles_post_ra>
